<compile_context>
chip_gen: v5e
topology: v5e:2x2
jax: 0.10.0
libtpu: 0.0.40
codegen_flags: <defaults>
</compile_context>

<pallas_src>
import functools

import jax
import jax.numpy as jnp
from jax import lax
from jax.experimental import pallas as pl
from jax.experimental.pallas import tpu as pltpu

HIDDEN = 128


def _disc_kernel(x_ref, w1_ref, b1_ref, w2_ref, b2_ref, out_ref, *, compute_dtype):
    # x_ref : (TB, D)    native dtype (f32) -- cast to bf16 here (VPU), not in the wrapper
    # w1_ref: (D, 128)   compute dtype (bf16), resident
    # b1_ref: (1, 128)   f32, resident
    # w2_ref: (1, 128)   f32, resident (second Linear's weight, lane-dense row)
    # b2_ref: (1, 1)     f32 scalar in SMEM
    # out_ref: (1, 1, TB) f32, lane-dense probabilities for this batch tile

    x_c = x_ref[...].astype(compute_dtype)

    # Linear(img_dim, 128): MXU matmul with f32 accumulation.
    h = jnp.dot(x_c, w1_ref[...], preferred_element_type=jnp.float32)     # (TB, 128)
    h = h + b1_ref[...]

    # LeakyReLU(0.1): max(h, 0.1*h) is exact and one VALU op cheaper than where().
    h = jnp.maximum(h, 0.1 * h)

    # Linear(128, 1) as a (1,128) x (TB,128)^K contraction -> lane-dense (1, TB) logits row.
    logits = lax.dot_general(
        w2_ref[...], h,
        dimension_numbers=(((1,), (1,)), ((), ())),
        preferred_element_type=jnp.float32,
    ) + b2_ref[0, 0]                                                      # (1, TB)

    # Exact sigmoid (approx reciprocal can escape [0,1], which is bad for log-loss).
    probs = 1.0 / (1.0 + jnp.exp(-logits))
    out_ref[...] = probs.reshape(out_ref.shape).astype(out_ref.dtype)


def _vmem_capacity_bytes():
    try:
        return int(pltpu.get_tpu_info().vmem_capacity_bytes)
    except Exception:
        return 64 << 20  # conservative fallback (v7x per-TensorCore VMEM)


def discriminator_forward(x, w1, b1, w2, b2, *, tile_batch=None,
                          compute_dtype=jnp.bfloat16):
    """x: (B, D) float32. Returns (B, 1) float32 probabilities in [0, 1]."""
    B, D = x.shape
    assert w1.shape == (D, HIDDEN)

    # Kernel-side parameter layout (tiny, resident tensors -> one-time casts are fine).
    b1 = b1.reshape(1, HIDDEN).astype(jnp.float32)
    w2 = w2.reshape(1, HIDDEN).astype(jnp.float32)
    b2 = b2.reshape(1, 1).astype(jnp.float32)
    w1_c = w1.astype(compute_dtype)
    # NOTE: x is deliberately NOT cast here -- the bf16 cast happens inside the kernel.

    x_itemsize = x.dtype.itemsize
    w_itemsize = jnp.dtype(compute_dtype).itemsize

    # ---- generation-aware tile-size / VMEM policy --------------------------------------
    vmem_cap = _vmem_capacity_bytes()
    budget = min(vmem_cap // 2, 40 << 20)                 # per-kernel VMEM target
    fixed = (2 * D * HIDDEN * w_itemsize                  # w1 (<=2 buffers, conservative)
             + 4 * HIDDEN * 4                             # b1, w2
             + (1 << 20))                                 # compiler slack
    per_row = 2 * D * x_itemsize + HIDDEN * 4 + 2 * 4     # x double-buffer + live h + out

    b_pad = ((B + 7) // 8) * 8
    if tile_batch is None:
        tb = max(8, (budget - fixed) // per_row)
        tb = min(tb, 4096, b_pad)
        if B >= 16:
            # Guarantee >=2 grid steps so "parallel" can shard across v7x's two TCs.
            tb = min(tb, (((b_pad + 1) // 2 + 7) // 8) * 8)
    else:
        tb = min(max(8, ((tile_batch + 7) // 8) * 8), b_pad)
    tb = max(8, (tb // 8) * 8)
    if tb >= B:
        tb = B                                            # single full-extent block
    G = pl.cdiv(B, tb)

    # Raise scoped VMEM only when needed (v5e default is 16 MiB); stay well under v7x's
    # 64 MiB physical capacity.
    est_vmem = (2 * tb * D * x_itemsize
                + 2 * D * HIDDEN * w_itemsize
                + tb * HIDDEN * 4
                + 4 * HIDDEN * 4
                + 2 * tb * 4
                + (1 << 20))
    needed = est_vmem + (4 << 20)
    vmem_limit = None
    if needed > (16 << 20):
        vmem_limit = int(min(max(needed, 32 << 20), vmem_cap * 3 // 4))

    cost = pl.CostEstimate(
        flops=2 * B * D * HIDDEN + 2 * B * HIDDEN + 4 * B * HIDDEN,
        transcendentals=B,
        bytes_accessed=(x.size * x_itemsize
                        + w1_c.size * w_itemsize
                        + (2 * HIDDEN + 1) * 4
                        + G * tb * 4),
    )

    kernel = functools.partial(_disc_kernel, compute_dtype=compute_dtype)

    def build(single_buffer_weights):
        res = {"pipeline_mode": pl.Buffered(1)} if single_buffer_weights else {}
        return pl.pallas_call(
            kernel,
            out_shape=jax.ShapeDtypeStruct((G, 1, tb), jnp.float32),
            grid_spec=pltpu.PrefetchScalarGridSpec(
                num_scalar_prefetch=0,
                grid=(G,),
                in_specs=[
                    pl.BlockSpec((tb, D), lambda i: (i, 0)),              # x: streamed per tile
                    pl.BlockSpec((D, HIDDEN), lambda i: (0, 0), **res),   # w1: resident
                    pl.BlockSpec((1, HIDDEN), lambda i: (0, 0), **res),   # b1: resident
                    pl.BlockSpec((1, HIDDEN), lambda i: (0, 0), **res),   # w2: resident
                    pl.BlockSpec(memory_space=pltpu.MemorySpace.SMEM),    # b2: SMEM scalar
                ],
                out_specs=pl.BlockSpec((1, 1, tb), lambda i: (i, 0, 0)),  # lane-dense row
            ),
            compiler_params=pltpu.CompilerParams(
                dimension_semantics=("parallel",),
                vmem_limit_bytes=vmem_limit,
            ),
            cost_estimate=cost,
        )

    try:
        out_rows = build(True)(x, w1_c, b1, w2, b2)
    except Exception:
        # Fallback for jax builds where single-buffered pipeline_mode isn't accepted.
        out_rows = build(False)(x, w1_c, b1, w2, b2)

    # (G, 1, tb) lane-dense slab -> (B, 1); padded tail columns (if any) are dropped.
    return out_rows.reshape(-1)[:B].reshape(B, 1)


def init_params(key, img_dimension):
    """Deterministic init mimicking PyTorch's default Linear init (uniform +-1/sqrt(fan_in))."""
    k1, k2, k3, k4 = jax.random.split(key, 4)
    bound1 = 1.0 / jnp.sqrt(img_dimension)
    bound2 = 1.0 / jnp.sqrt(HIDDEN)
    w1 = jax.random.uniform(k1, (img_dimension, HIDDEN), jnp.float32, -bound1, bound1)
    b1 = jax.random.uniform(k2, (1, HIDDEN), jnp.float32, -bound1, bound1)
    w2 = jax.random.uniform(k3, (1, HIDDEN), jnp.float32, -bound2, bound2)
    b2 = jax.random.uniform(k4, (1, 1), jnp.float32, -bound2, bound2)
    return w1, b1, w2, b2


def _reference(x, w1, b1, w2, b2):
    # Same math in plain JAX, with the same in-kernel bf16 rounding of x / w1.
    xb = x.astype(jnp.bfloat16).astype(jnp.float32)
    w1b = w1.astype(jnp.bfloat16).astype(jnp.float32)
    h = xb @ w1b + b1.reshape(1, HIDDEN)
    h = jnp.where(h > 0, h, 0.1 * h)
    logits = h @ w2.reshape(1, HIDDEN).T + b2.reshape(1, 1)
    return jax.nn.sigmoid(logits)


if __name__ == "__main__":
    key = jax.random.PRNGKey(0)
    k_x, k_p = jax.random.split(key)

    batch = 24
    img_dimension = 64  # e.g. 8x8 flattened image

    x = jax.random.normal(k_x, (batch, img_dimension), jnp.float32)
    w1, b1, w2, b2 = init_params(k_p, img_dimension)

    # Multi-tile path (grid of 3, exact tiling).
    out_tiled = discriminator_forward(x, w1, b1, w2, b2, tile_batch=8)
    out_tiled = jax.block_until_ready(out_tiled)

    # Auto-tile path (tb=16 -> grid of 2, exercises the partial trailing block + padding).
    out_auto = discriminator_forward(x, w1, b1, w2, b2)
    out_auto = jax.block_until_ready(out_auto)

    ref = _reference(x, w1, b1, w2, b2)

    assert out_tiled.shape == (batch, 1)
    assert out_auto.shape == (batch, 1)
    # bf16 streaming of x/w1 => relaxed (but tight) tolerance against the bf16 reference.
    assert jnp.allclose(out_tiled, ref, atol=2e-3, rtol=2e-3), (
        jnp.max(jnp.abs(out_tiled - ref)))
    assert jnp.allclose(out_auto, ref, atol=2e-3, rtol=2e-3), (
        jnp.max(jnp.abs(out_auto - ref)))
    assert jnp.allclose(out_tiled, out_auto, atol=1e-5, rtol=1e-5)
    assert bool(jnp.all((out_auto >= 0.0) & (out_auto <= 1.0)))

    print("KERNEL_OK")
</pallas_src>

<mosaic_0001>
module attributes {stable_mosaic.version = 11 : i64} {
  func.func @_disc_kernel(%arg0: i32, %arg1: memref<8x64xf32, #tpu.memory_space<vmem>>, %arg2: memref<64x128xbf16, #tpu.memory_space<vmem>>, %arg3: memref<1x128xf32, #tpu.memory_space<vmem>>, %arg4: memref<1x128xf32, #tpu.memory_space<vmem>>, %arg5: memref<1x1xf32, #tpu.memory_space<smem>>, %arg6: memref<1x1x8xf32, #tpu.memory_space<vmem>>) attributes {dimension_semantics = [#tpu.dimension_semantics<parallel>], iteration_bounds = array<i64: 3>, scalar_prefetch = 0 : i64, scratch_operands = 0 : i64, tpu.core_type = #tpu.core_type<tc>, window_params = [{transform_indices = @transform_0, window_bounds = array<i64: 8, 64>}, {pipeline_mode = #tpu.pipeline_mode<synchronous>, transform_indices = @transform_1, window_bounds = array<i64: 64, 128>}, {pipeline_mode = #tpu.pipeline_mode<synchronous>, transform_indices = @transform_2, window_bounds = array<i64: 1, 128>}, {pipeline_mode = #tpu.pipeline_mode<synchronous>, transform_indices = @transform_3, window_bounds = array<i64: 1, 128>}, {transform_indices = @transform_4, window_bounds = array<i64: 1, 1>}, {transform_indices = @transform_5, window_bounds = array<i64: 1, 1, 8>}]} {
    %c0 = arith.constant 0 : index
    %c0_0 = arith.constant 0 : index
    %0 = vector.load %arg1[%c0, %c0_0] : memref<8x64xf32, #tpu.memory_space<vmem>>, vector<8x64xf32>
    %1 = arith.truncf %0 : vector<8x64xf32> to vector<8x64xbf16>
    %c0_1 = arith.constant 0 : index
    %c0_2 = arith.constant 0 : index
    %2 = vector.load %arg2[%c0_1, %c0_2] : memref<64x128xbf16, #tpu.memory_space<vmem>>, vector<64x128xbf16>
    %cst = arith.constant dense<0.000000e+00> : vector<8x128xf32>
    %3 = tpu.matmul %1, %2, %cst {dimension_numbers = #tpu.dot_dimension_numbers<[1], [0], [0], [1], [0, 0, 1, 1], [], []>} : vector<8x64xbf16>, vector<64x128xbf16>, vector<8x128xf32> -> vector<8x128xf32>
    %c0_3 = arith.constant 0 : index
    %c0_4 = arith.constant 0 : index
    %4 = vector.load %arg3[%c0_3, %c0_4] : memref<1x128xf32, #tpu.memory_space<vmem>>, vector<1x128xf32>
    %5 = vector.broadcast %4 : vector<1x128xf32> to vector<8x128xf32>
    %6 = arith.addf %3, %5 : vector<8x128xf32>
    %cst_5 = arith.constant 1.000000e-01 : f32
    %7 = vector.broadcast %cst_5 : f32 to vector<8x128xf32>
    %8 = arith.mulf %7, %6 : vector<8x128xf32>
    %9 = arith.maximumf %6, %8 : vector<8x128xf32>
    %c0_6 = arith.constant 0 : index
    %c0_7 = arith.constant 0 : index
    %10 = vector.load %arg4[%c0_6, %c0_7] : memref<1x128xf32, #tpu.memory_space<vmem>>, vector<1x128xf32>
    %cst_8 = arith.constant dense<0.000000e+00> : vector<1x8xf32>
    %11 = tpu.matmul %10, %9, %cst_8 {dimension_numbers = #tpu.dot_dimension_numbers<[1], [1], [0], [0], [0, 0, 1, 0], [], []>} : vector<1x128xf32>, vector<8x128xf32>, vector<1x8xf32> -> vector<1x8xf32>
    %c0_9 = arith.constant 0 : index
    %c0_10 = arith.constant 0 : index
    %12 = memref.load %arg5[%c0_9, %c0_10] : memref<1x1xf32, #tpu.memory_space<smem>>
    %13 = vector.broadcast %12 : f32 to vector<1x8xf32>
    %14 = arith.addf %11, %13 : vector<1x8xf32>
    %cst_11 = arith.constant 0.000000e+00 : f32
    %15 = vector.broadcast %cst_11 : f32 to vector<1x8xf32>
    %16 = arith.subf %15, %14 : vector<1x8xf32>
    %17 = math.exp %16 : vector<1x8xf32>
    %cst_12 = arith.constant 1.000000e+00 : f32
    %18 = vector.broadcast %cst_12 : f32 to vector<1x8xf32>
    %19 = arith.addf %18, %17 : vector<1x8xf32>
    %cst_13 = arith.constant 1.000000e+00 : f32
    %20 = vector.broadcast %cst_13 : f32 to vector<1x8xf32>
    %21 = arith.divf %20, %19 : vector<1x8xf32>
    %22 = vector.shape_cast %21 : vector<1x8xf32> to vector<1x1x8xf32>
    %c0_14 = arith.constant 0 : index
    %c0_15 = arith.constant 0 : index
    %c0_16 = arith.constant 0 : index
    %23 = vector.load %arg6[%c0_14, %c0_15, %c0_16] : memref<1x1x8xf32, #tpu.memory_space<vmem>>, vector<1x1x8xf32>
    tpu.vector_store %arg6[%c0_14, %c0_15, %c0_16], %22 {strides = array<i32>} : memref<1x1x8xf32, #tpu.memory_space<vmem>>, vector<1x1x8xf32>,
    return
  }
  func.func @transform_0(%arg0: i32) -> (i32, i32) {
    %c0_i32 = arith.constant 0 : i32
    %c0_i32_0 = arith.constant 0 : i32
    return %arg0, %c0_i32 : i32, i32
  }
  func.func @transform_1(%arg0: i32) -> (i32, i32) {
    %c0_i32 = arith.constant 0 : i32
    %c0_i32_0 = arith.constant 0 : i32
    %c0_i32_1 = arith.constant 0 : i32
    return %c0_i32, %c0_i32_0 : i32, i32
  }
  func.func @transform_2(%arg0: i32) -> (i32, i32) {
    %c0_i32 = arith.constant 0 : i32
    %c0_i32_0 = arith.constant 0 : i32
    %c0_i32_1 = arith.constant 0 : i32
    return %c0_i32, %c0_i32_0 : i32, i32
  }
  func.func @transform_3(%arg0: i32) -> (i32, i32) {
    %c0_i32 = arith.constant 0 : i32
    %c0_i32_0 = arith.constant 0 : i32
    %c0_i32_1 = arith.constant 0 : i32
    return %c0_i32, %c0_i32_0 : i32, i32
  }
  func.func @transform_4(%arg0: i32) -> (i32, i32) {
    %c0_i32 = arith.constant 0 : i32
    %c0_i32_0 = arith.constant 0 : i32
    %c0_i32_1 = arith.constant 0 : i32
    return %c0_i32, %c0_i32_0 : i32, i32
  }
  func.func @transform_5(%arg0: i32) -> (i32, i32, i32) {
    %c0_i32 = arith.constant 0 : i32
    %c0_i32_0 = arith.constant 0 : i32
    %c0_i32_1 = arith.constant 0 : i32
    return %arg0, %c0_i32, %c0_i32_0 : i32, i32, i32
  }
}

module attributes {stable_mosaic.version = 11 : i64} {
  func.func @_disc_kernel(%arg0: i32, %arg1: memref<8x64xf32, #tpu.memory_space<vmem>>, %arg2: memref<64x128xbf16, #tpu.memory_space<vmem>>, %arg3: memref<1x128xf32, #tpu.memory_space<vmem>>, %arg4: memref<1x128xf32, #tpu.memory_space<vmem>>, %arg5: memref<1x1xf32, #tpu.memory_space<smem>>, %arg6: memref<1x1x8xf32, #tpu.memory_space<vmem>>) attributes {dimension_semantics = [#tpu.dimension_semantics<parallel>], iteration_bounds = array<i64: 3>, scalar_prefetch = 0 : i64, scratch_operands = 0 : i64, tpu.core_type = #tpu.core_type<tc>, window_params = [{transform_indices = @transform_0, window_bounds = array<i64: 8, 64>}, {pipeline_mode = #tpu.pipeline_mode<synchronous>, transform_indices = @transform_1, window_bounds = array<i64: 64, 128>}, {pipeline_mode = #tpu.pipeline_mode<synchronous>, transform_indices = @transform_2, window_bounds = array<i64: 1, 128>}, {pipeline_mode = #tpu.pipeline_mode<synchronous>, transform_indices = @transform_3, window_bounds = array<i64: 1, 128>}, {transform_indices = @transform_4, window_bounds = array<i64: 1, 1>}, {transform_indices = @transform_5, window_bounds = array<i64: 1, 1, 8>}]} {
    %c0 = arith.constant 0 : index
    %c0_0 = arith.constant 0 : index
    %0 = vector.load %arg1[%c0, %c0_0] : memref<8x64xf32, #tpu.memory_space<vmem>>, vector<8x64xf32>
    %1 = arith.truncf %0 : vector<8x64xf32> to vector<8x64xbf16>
    %c0_1 = arith.constant 0 : index
    %c0_2 = arith.constant 0 : index
    %2 = vector.load %arg2[%c0_1, %c0_2] : memref<64x128xbf16, #tpu.memory_space<vmem>>, vector<64x128xbf16>
    %cst = arith.constant dense<0.000000e+00> : vector<8x128xf32>
    %3 = tpu.matmul %1, %2, %cst {dimension_numbers = #tpu.dot_dimension_numbers<[1], [0], [0], [1], [0, 0, 1, 1], [], []>} : vector<8x64xbf16>, vector<64x128xbf16>, vector<8x128xf32> -> vector<8x128xf32>
    %c0_3 = arith.constant 0 : index
    %c0_4 = arith.constant 0 : index
    %4 = vector.load %arg3[%c0_3, %c0_4] : memref<1x128xf32, #tpu.memory_space<vmem>>, vector<1x128xf32>
    %5 = vector.broadcast %4 : vector<1x128xf32> to vector<8x128xf32>
    %6 = arith.addf %3, %5 : vector<8x128xf32>
    %cst_5 = arith.constant 1.000000e-01 : f32
    %7 = vector.broadcast %cst_5 : f32 to vector<8x128xf32>
    %8 = arith.mulf %7, %6 : vector<8x128xf32>
    %9 = arith.maximumf %6, %8 : vector<8x128xf32>
    %c0_6 = arith.constant 0 : index
    %c0_7 = arith.constant 0 : index
    %10 = vector.load %arg4[%c0_6, %c0_7] : memref<1x128xf32, #tpu.memory_space<vmem>>, vector<1x128xf32>
    %cst_8 = arith.constant dense<0.000000e+00> : vector<1x8xf32>
    %11 = tpu.matmul %10, %9, %cst_8 {dimension_numbers = #tpu.dot_dimension_numbers<[1], [1], [0], [0], [0, 0, 1, 0], [], []>} : vector<1x128xf32>, vector<8x128xf32>, vector<1x8xf32> -> vector<1x8xf32>
    %c0_9 = arith.constant 0 : index
    %c0_10 = arith.constant 0 : index
    %12 = memref.load %arg5[%c0_9, %c0_10] : memref<1x1xf32, #tpu.memory_space<smem>>
    %13 = vector.broadcast %12 : f32 to vector<1x8xf32>
    %14 = arith.addf %11, %13 : vector<1x8xf32>
    %cst_11 = arith.constant 0.000000e+00 : f32
    %15 = vector.broadcast %cst_11 : f32 to vector<1x8xf32>
    %16 = arith.subf %15, %14 : vector<1x8xf32>
    %17 = math.exp %16 : vector<1x8xf32>
    %cst_12 = arith.constant 1.000000e+00 : f32
    %18 = vector.broadcast %cst_12 : f32 to vector<1x8xf32>
    %19 = arith.addf %18, %17 : vector<1x8xf32>
    %cst_13 = arith.constant 1.000000e+00 : f32
    %20 = vector.broadcast %cst_13 : f32 to vector<1x8xf32>
    %21 = arith.divf %20, %19 : vector<1x8xf32>
    %22 = vector.shape_cast %21 : vector<1x8xf32> to vector<1x1x8xf32>
    %c0_14 = arith.constant 0 : index
    %c0_15 = arith.constant 0 : index
    %c0_16 = arith.constant 0 : index
    %23 = vector.load %arg6[%c0_14, %c0_15, %c0_16] : memref<1x1x8xf32, #tpu.memory_space<vmem>>, vector<1x1x8xf32>
    tpu.vector_store %arg6[%c0_14, %c0_15, %c0_16], %22 {strides = array<i32>} : memref<1x1x8xf32, #tpu.memory_space<vmem>>, vector<1x1x8xf32>,
    return
  }
  func.func @transform_0(%arg0: i32) -> (i32, i32) {
    %c0_i32 = arith.constant 0 : i32
    %c0_i32_0 = arith.constant 0 : i32
    return %arg0, %c0_i32 : i32, i32
  }
  func.func @transform_1(%arg0: i32) -> (i32, i32) {
    %c0_i32 = arith.constant 0 : i32
    %c0_i32_0 = arith.constant 0 : i32
    %c0_i32_1 = arith.constant 0 : i32
    return %c0_i32, %c0_i32_0 : i32, i32
  }
  func.func @transform_2(%arg0: i32) -> (i32, i32) {
    %c0_i32 = arith.constant 0 : i32
    %c0_i32_0 = arith.constant 0 : i32
    %c0_i32_1 = arith.constant 0 : i32
    return %c0_i32, %c0_i32_0 : i32, i32
  }
  func.func @transform_3(%arg0: i32) -> (i32, i32) {
    %c0_i32 = arith.constant 0 : i32
    %c0_i32_0 = arith.constant 0 : i32
    %c0_i32_1 = arith.constant 0 : i32
    return %c0_i32, %c0_i32_0 : i32, i32
  }
  func.func @transform_4(%arg0: i32) -> (i32, i32) {
    %c0_i32 = arith.constant 0 : i32
    %c0_i32_0 = arith.constant 0 : i32
    %c0_i32_1 = arith.constant 0 : i32
    return %c0_i32, %c0_i32_0 : i32, i32
  }
  func.func @transform_5(%arg0: i32) -> (i32, i32, i32) {
    %c0_i32 = arith.constant 0 : i32
    %c0_i32_0 = arith.constant 0 : i32
    %c0_i32_1 = arith.constant 0 : i32
    return %arg0, %c0_i32, %c0_i32_0 : i32, i32, i32
  }
}

</mosaic_0001>

<bundles_post_ra>
// kernel: tpu_custom_call.1
= control target key start
LH: loop header
LB: loop body
LE: loop exit
PB: predicated region body
PF: predicated region fallthrough
CT: control target
= control target key end

     0   :  { %s855_s0 = inlined_call_operand.hbm [shape: f32[24,64], index: 0, kind: input, shape index: {}]   ;;  %s856_s1 = inlined_call_operand.hbm [shape: bf16[64,128], index: 1, kind: input, shape index: {}]   ;;  %s857_s2 = inlined_call_operand.vmem [shape: f32[1,128], index: 2, kind: input, shape index: {}]   ;;  %s858_s3 = inlined_call_operand.vmem [shape: f32[1,128], index: 3, kind: input, shape index: {}]   ;;  %s859_s4 = inlined_call_operand.<no memory space> [shape: f32[1,1], index: 4, kind: input, shape index: {}]   ;;  %s860_s5 = inlined_call_operand.hbm [shape: f32[3,1,8], index: 5, kind: output, shape index: {}]  }
   0x1   :  { %10 = sst [smem:[#allocation2]] %s859_s4 }
   0x2   :  { %11 = vsyncpa [#allocation4], 0 }
   0x3   :  { %13 = vsyncpa [#allocation4 + $0x1], 0 }
   0x4   :  { %14 = vsyncpa [#allocation7], 0 }
   0x5   :  { %15 = vsyncpa [#allocation5], 0 }
   0x6   :  { %17 = vsyncpa [#allocation5 + $0x1], 0  ;;  %s714_s20 = smov 0   ;;  %s716_s21 = smov 0  }
   0x7   :  { %s718_s22 = smov 0   ;;  %s720_s23 = smov 0  }
   0x8 LB: > { %s175_s25 = sshll.u32 %s856_s1, 4  ;;  %s738_s26 = sadd.s32 4294967295, %s676_s23   ;;  %s676_s23 = sphi %s720_s23, %s869_s23   ;;  %s672_s22 = sphi %s718_s22, %s868_s22   ;;  %s668_s21 = sphi %s716_s21, %s867_s21   ;;  %s664_s20 = sphi %s714_s20, %s866_s20   ;;  %s176_s25 = int_to_ptr.hbm [resolvable:$true] %s175_s25 }
   0x9   : > { %p451_p0 = scmp.ge.s32.totalorder %s676_s23, 1  ;;  %p44_p1 = scmp.eq.s32.totalorder %s738_s26, 0 }
   0xa   : > { %p164_p2 = scmp.lt.s32.totalorder %s676_s23, 4  ;;  %s678_s28 = smov [#allocation6]  }
   0xb   : > { %s177_s29 = sshll.u32 %s678_s28, 4  ;;  %s679_s30 = smov 64   ;;  %s178_s29 = int_to_ptr.vmem [resolvable:$true] %s177_s29 }
   0xc   : > { %p743_p3 = pnand %p451_p0, %p164_p2  ;;  %s680_s6 = smov 4  }
   0xd   : > { %s450_s7 = sadd.s32 4294967294, %s676_s23   ;;  %s753_s8 = sadd.s32 1, %s676_s23  }
   0xe   : > { %p490_p4 = pneg %p743_p3  ;;  %s30_s9 = sadd.s32 1, %s672_s22 }
   0xf   : > { %s27_s10 = ssub.s32 %s676_s23, %s753_s8  ;;  %p37_p6 = scmp.ne.s32.totalorder %s672_s22, %s668_s21 }
  0x10   : > { %p491_p5 = pnand %p490_p4, %p44_p1  ;;  %p28_p7 = scmp.eq.s32.totalorder %s27_s10, 0 }
  0x11   : > { %p38_p8 = scmp.eq.s32.totalorder %s676_s23, 0  ;;  %p43_p9 = scmp.ne.s32.totalorder %s668_s21, %s664_s20 }
  0x12   : > { %493 = dma.hbm_to_vmem [thread:$0]  (!%p491_p5), %s176_s25, 512, %s178_s29, [#allocation7], %s679_s30, %s679_s30, %s680_s6  }
  0x13   : > { %p151_p10 = scmp.eq.s32.totalorder %s738_s26, 2  ;;  %p769_p11 = por %p44_p1, %p43_p9 }
  0x14   : > { %s765_s11 = scalar_select %p28_p7, %s672_s22, %s30_s9  }
  0x15   : > { %p773_p12 = por %p151_p10, %p37_p6  ;;  %p157_p13 = scmp.eq.s32.totalorder %s450_s7, 2 }
  0x16   : > { %p39_p0 = por %p38_p8, %p37_p6  ;;  %s200_s14 = sand.u32 1, %s672_s22  }
  0x17   : > { %p778_p2 = por %p157_p13, %p43_p9  ;;  %p503_p4 = scmp.lt.s32.totalorder %s676_s23, 3 }
  0x18   : > { %s454_s16 = sshll.u32 %s200_s14, 3  ;;  %s455_s17 = sshll.u32 %s676_s23, 3 }
  0x19   : > { %s208_s4 = scalar_lea.hbm %s855_s0, %s455_s17  ;;  %s204_s25 = scalar_lea.vmem [#allocation3], %s454_s16 }
  0x1a   : > { %s210_s24 = sshll.u32 %s208_s4, 4  ;;  %s212_s28 = sshll.u32 %s204_s25, 4  ;;  %s211_s24 = int_to_ptr.hbm [resolvable:$true] %s210_s24  ;;  %s213_s28 = int_to_ptr.vmem [resolvable:$true] %s212_s28 }
  0x1b   : > { %p787_p5 = pnand %p503_p4, %p39_p0  ;;  %s201_s30 = scalar_lea.sflag [#allocation4], %s200_s14 }
  0x1c   : > { %s576_s6 = sshra.s32 %s211_s24, 4  ;;  %s583_s16 = scalar_lea.hbm %s855_s0, 24  ;;  %s577_s6 = int_to_ptr.hbm [resolvable:$true] %s576_s6 }
  0x1d   : > { %s578_s7 = scalar_lea.hbm %s577_s6, 8  ;;  %p580_p7 = pneg %p787_p5 }
  0x1e   : > { %p579_p6 = scmp.ne.s32.totalorder %s577_s6, %s578_s7  ;;  %p584_p10 = scmp.lt.s32.totalorder %s577_s6, %s855_s0 }
  0x1f   : > { %p585_p13 = scmp.lt.s32.totalorder %s583_s16, %s578_s7 }
  0x20   : > { %p581_p8 = pnand %p580_p7, %p579_p6 }
  0x21   : > { %p586_p0 = por %p585_p13, %p584_p10 }
  0x22   : > { %p582_p9 = pneg %p581_p8 }
  0x24   : > { %p587_p4 = pnand %p586_p0, %p582_p9 }
  0x26   : > { %590 = shalt.err (!%p587_p4)
}
  0x27   : > { %497 = dma.hbm_to_vmem [thread:$0]  (!%p787_p5), %s211_s24, 128, %s213_s28, %s201_s30  }
  0x28   : > { %221 = sbr.rel (%p743_p3) target bundleno = 360 (0x168), region = 40  ;;  %s804_s14 = sand.u32 (!%p743_p3), 1, %s668_s21  }
  0x29   : > { %s457_s19 = sshll.u32 (!%p743_p3), %s804_s14, 3  ;;  %s224_s4 = scalar_lea.sflag (!%p743_p3), [#allocation4], %s804_s14 }
  0x2a   : > { %s227_s25 = scalar_lea.vmem (!%p743_p3), [#allocation3], %s457_s19 }
  0x2d   : > { %651 = dma.done.wait (%p769_p11), %s224_s4, 128  }
  0x2e   : > { %653 = vsyncadd (%p769_p11), %s224_s4, 4294967168 }
  0x2f   : > { %655 = dma.done.wait (%p44_p1), [#allocation7], 512  }
  0x30   : > { %657 = vsyncadd (%p44_p1), [#allocation7], 4294966784  ;;  %v481_v0 = vld [vmem:[#allocation6 + $0x18] sm:$0xff]  ;;  %v480_v1 = vld [vmem:[#allocation6 + $0x10] sm:$0xff]  ;;  %vm298_vm0 = vcmask 523264   ;;  %s318_s29 = sld [smem:[#allocation2]]  ;;  %s370_s7 = scalar_lea.hbm %s860_s5, %s738_s26 }
  0x31   : > { %306 = vmatpush.bf16.msra.mxu0 %v481_v0  ;;  %v479_v2 = vld [vmem:[#allocation6 + $0x8] sm:$0xff]  ;;  %v478_v3 = vld [vmem:[#allocation6] sm:$0xff]  ;;  %v260_v4 = vld [vmem:[%s227_s25] sm:$0xff]  ;;  %s258_s9 = scalar_lea.vmem [#allocation8], %s804_s14  ;;  %s374_s16 = sshll.u32 %s370_s7, 4  ;;  %vm359_vm4 = vcmask 57344   ;;  %s375_s16 = int_to_ptr.hbm [resolvable:$true] %s374_s16 }
  0x32   : > { %v261_v5 = vpack.c.bf16 %v260_v4, %v260_v4  ;;  %v541_v6 = vld [vmem:[%s857_s2] ss:$0 sm:$0xff]  ;;  %s372_s10 = sshll.u32 %s258_s9, 4  ;;  %s362_s26 = scalar_lea.sflag [#allocation5], %s804_s14  ;;  %s373_s10 = int_to_ptr.vmem [resolvable:$true] %s372_s10 }
  0x33   : > { %v317_v11 = vld [vmem:[%s858_s3] sm:$0x1]  ;;  %s620_s17 = sshra.s32 %s375_s16, 4  ;;  %s626_s25 = scalar_lea.hbm %s860_s5, 3  ;;  %s621_s17 = int_to_ptr.hbm [resolvable:$true] %s620_s17 }
  0x34   : > { %s622_s18 = scalar_lea.hbm %s621_s17, 1  ;;  %p627_p5 = scmp.lt.s32.totalorder %s621_s17, %s860_s5 }
  0x35   : > { %307 = vmatpush.bf16.msra.mxu0 %v480_v1  ;;  %p623_p1 = scmp.ne.s32.totalorder %s621_s17, %s622_s18  ;;  %p628_p6 = scmp.lt.s32.totalorder %s626_s25, %s622_s18 }
  0x36   : > { %v319_v13 = vstv %s318_s29 }
  0x37   : > { %p624_p3 = pnand %p623_p1, %p773_p12  ;;  %p629_p7 = por %p628_p6, %p627_p5 }
  0x39   : > { %308 = vmatpush.bf16.msra.mxu0 %v479_v2  ;;  %p625_p11 = pneg %p624_p3 }
  0x3b   : > { %p630_p8 = pnand %p629_p7, %p625_p11 }
  0x3d   : > { %309 = vmatpush.bf16.msra.mxu0 %v478_v3 }
  0x40   : > { %475 = vmatmul.msk.bf16.vlgmr.msra.gmra.mxu0 %vm298_vm0, %v261_v5 }
  0xbd   : > { %v311_v7 = vpop.f32.mrf.mxu0 }
  0xbe   : > { %v312_v8 = vadd.f32 %v541_v6, %v311_v7 }
  0xc0   : > { %v315_v9 = vmul.f32 0.1, %v312_v8 }
  0xc2   : > { %v316_v10 = vmax.f32 %v312_v8, %v315_v9 }
  0xc4   : > { %335 = vmatpush.xpose.msra.mxu1 %v316_v10 }
  0xc5   : > { %v313_v12 = vpop.f32.mrf.mxu0 }
  0xc7   : > { %336 = vmatmul.f32.vlgmr.msra.gmra.mxu1 %v317_v11 }
 0x144   : > { %v337_v14 = vpop.f32.mrf.mxu1 }
 0x145   : > { %v338_v15 = vadd.f32 %v337_v14, %v319_v13 }
 0x147   : > { %v340_v16 = vsub.f32 0.0, %v338_v15 }
 0x149   : > { %v341_v17 = vmul.f32 1.442695, %v340_v16 }
 0x14b   : > { %542 = vpow2.f32 %v341_v17 }
 0x151   : > { %v543_v18 = vpop.eup %542 }
 0x152   : > { %v343_v19 = vadd.f32 1.0, %v543_v18 }
 0x154   : > { %544 = vrcp.f32 %v343_v19  ;;  %v355_v23 = vand.u32 2147483648, %v343_v19  ;;  %v353_v25 = vand.u32 2147483647, %v343_v19  ;;  %vm349_vm2 = vweird.f32 %v343_v19 }
 0x156   : > { %v356_v27 = vor.u32 1.1754944e-38, %v355_v23  ;;  %vm354_vm5 = vcmp.eq.f32.partialorder %v353_v25, 8.507059e+37 }
 0x15a   : > { %v545_v20 = vpop.eup %544 }
 0x15b   : > { %v345_v21 = vmul.f32 %v545_v20, %v343_v19  ;;  %vm350_vm1 = vweird.f32 %v545_v20 }
 0x15c   : > { %vm351_vm3 = vmor %vm349_vm2, %vm350_vm1 }
 0x15d   : > { %v346_v22 = vsub.f32 1.0, %v345_v21 }
 0x15f   : > { %v347_v24 = vmul.f32 %v545_v20, %v346_v22 }
 0x161   : > { %v348_v26 = vadd.f32 %v545_v20, %v347_v24 }
 0x163   : > { %v352_v28 = vsel %vm351_vm3, %v545_v20, %v348_v26 }
 0x164   : > { %v357_v29 = vsel %vm354_vm5, %v356_v27, %v352_v28 }
 0x165   : > { %360 = vst.msk [vmem:[%s258_s9] sm:$0x1] %vm359_vm4, %v357_v29 }
 0x166   : > { %633 = shalt.err (!%p630_p8)
}
 0x167   : > { %488 = dma.vmem_to_hbm [thread:$0]  (%p773_p12), %s373_s10, 16, %s375_s16, %s362_s26  }
 0x168 PF: > { %p505_p9 = scmp.ge.s32.totalorder %s676_s23, 2  ;;  %s386_s14 = sand.u32 1, %s664_s20  }
 0x169   : > { %s387_s24 = scalar_lea.sflag [#allocation5], %s386_s14 }
 0x16a   : > { %p499_p10 = pnand %p505_p9, %p778_p2 }
 0x16c   : > { %p500_p13 = pneg %p499_p10 }
 0x16e   : > { %659 = dma.done.wait (%p500_p13), %s387_s24, 16  }
 0x16f   : > { %661 = vsyncadd (%p500_p13), %s387_s24, 4294967280  ;;  %p20_p0 = scmp.ge.s32.totalorder %s753_s8, 5   ;;  %s866_s20 = smov %s668_s21 }
 0x170   : > { %s867_s21 = smov %s672_s22  ;;  %s868_s22 = smov %s765_s11 }
 0x171   : > { %s869_s23 = smov %s753_s8  ;;  %22 = sbr.rel (!%p20_p0) target bundleno = 8 (0x8), region = 89 }
 0x176   :  { %392 = vsyncpa [#allocation4], 1 }
 0x177   :  { %394 = vsyncpa [#allocation4 + $0x1], 1 }
 0x178   :  { %395 = vsyncpa [#allocation7], 1 }
 0x179   :  { %396 = vsyncpa [#allocation5], 1 }
 0x17a   :  { %398 = vsyncpa [#allocation5 + $0x1], 1 }

// kernel: tpu_custom_call.1
= control target key start
LH: loop header
LB: loop body
LE: loop exit
PB: predicated region body
PF: predicated region fallthrough
CT: control target
= control target key end

     0   :  { %s855_s0 = inlined_call_operand.hbm [shape: f32[24,64], index: 0, kind: input, shape index: {}]   ;;  %s856_s1 = inlined_call_operand.hbm [shape: bf16[64,128], index: 1, kind: input, shape index: {}]   ;;  %s857_s2 = inlined_call_operand.vmem [shape: f32[1,128], index: 2, kind: input, shape index: {}]   ;;  %s858_s3 = inlined_call_operand.vmem [shape: f32[1,128], index: 3, kind: input, shape index: {}]   ;;  %s859_s4 = inlined_call_operand.<no memory space> [shape: f32[1,1], index: 4, kind: input, shape index: {}]   ;;  %s860_s5 = inlined_call_operand.hbm [shape: f32[3,1,8], index: 5, kind: output, shape index: {}]  }
   0x1   :  { %10 = sst [smem:[#allocation2]] %s859_s4 }
   0x2   :  { %11 = vsyncpa [#allocation4], 0 }
   0x3   :  { %13 = vsyncpa [#allocation4 + $0x1], 0 }
   0x4   :  { %14 = vsyncpa [#allocation7], 0 }
   0x5   :  { %15 = vsyncpa [#allocation5], 0 }
   0x6   :  { %17 = vsyncpa [#allocation5 + $0x1], 0  ;;  %s714_s20 = smov 0   ;;  %s716_s21 = smov 0  }
   0x7   :  { %s718_s22 = smov 0   ;;  %s720_s23 = smov 0  }
   0x8 LB: > { %s175_s25 = sshll.u32 %s856_s1, 4  ;;  %s738_s26 = sadd.s32 4294967295, %s676_s23   ;;  %s676_s23 = sphi %s720_s23, %s869_s23   ;;  %s672_s22 = sphi %s718_s22, %s868_s22   ;;  %s668_s21 = sphi %s716_s21, %s867_s21   ;;  %s664_s20 = sphi %s714_s20, %s866_s20   ;;  %s176_s25 = int_to_ptr.hbm [resolvable:$true] %s175_s25 }
   0x9   : > { %p451_p0 = scmp.ge.s32.totalorder %s676_s23, 1  ;;  %p44_p1 = scmp.eq.s32.totalorder %s738_s26, 0 }
   0xa   : > { %p164_p2 = scmp.lt.s32.totalorder %s676_s23, 4  ;;  %s678_s28 = smov [#allocation6]  }
   0xb   : > { %s177_s29 = sshll.u32 %s678_s28, 4  ;;  %s679_s30 = smov 64   ;;  %s178_s29 = int_to_ptr.vmem [resolvable:$true] %s177_s29 }
   0xc   : > { %p743_p3 = pnand %p451_p0, %p164_p2  ;;  %s680_s6 = smov 4  }
   0xd   : > { %s450_s7 = sadd.s32 4294967294, %s676_s23   ;;  %s753_s8 = sadd.s32 1, %s676_s23  }
   0xe   : > { %p490_p4 = pneg %p743_p3  ;;  %s30_s9 = sadd.s32 1, %s672_s22 }
   0xf   : > { %s27_s10 = ssub.s32 %s676_s23, %s753_s8  ;;  %p37_p6 = scmp.ne.s32.totalorder %s672_s22, %s668_s21 }
  0x10   : > { %p491_p5 = pnand %p490_p4, %p44_p1  ;;  %p28_p7 = scmp.eq.s32.totalorder %s27_s10, 0 }
  0x11   : > { %p38_p8 = scmp.eq.s32.totalorder %s676_s23, 0  ;;  %p43_p9 = scmp.ne.s32.totalorder %s668_s21, %s664_s20 }
  0x12   : > { %493 = dma.hbm_to_vmem [thread:$0]  (!%p491_p5), %s176_s25, 512, %s178_s29, [#allocation7], %s679_s30, %s679_s30, %s680_s6  }
  0x13   : > { %p151_p10 = scmp.eq.s32.totalorder %s738_s26, 2  ;;  %p769_p11 = por %p44_p1, %p43_p9 }
  0x14   : > { %s765_s11 = scalar_select %p28_p7, %s672_s22, %s30_s9  }
  0x15   : > { %p773_p12 = por %p151_p10, %p37_p6  ;;  %p157_p13 = scmp.eq.s32.totalorder %s450_s7, 2 }
  0x16   : > { %p39_p0 = por %p38_p8, %p37_p6  ;;  %s200_s14 = sand.u32 1, %s672_s22  }
  0x17   : > { %p778_p2 = por %p157_p13, %p43_p9  ;;  %p503_p4 = scmp.lt.s32.totalorder %s676_s23, 3 }
  0x18   : > { %s454_s16 = sshll.u32 %s200_s14, 3  ;;  %s455_s17 = sshll.u32 %s676_s23, 3 }
  0x19   : > { %s208_s4 = scalar_lea.hbm %s855_s0, %s455_s17  ;;  %s204_s25 = scalar_lea.vmem [#allocation3], %s454_s16 }
  0x1a   : > { %s210_s24 = sshll.u32 %s208_s4, 4  ;;  %s212_s28 = sshll.u32 %s204_s25, 4  ;;  %s211_s24 = int_to_ptr.hbm [resolvable:$true] %s210_s24  ;;  %s213_s28 = int_to_ptr.vmem [resolvable:$true] %s212_s28 }
  0x1b   : > { %p787_p5 = pnand %p503_p4, %p39_p0  ;;  %s201_s30 = scalar_lea.sflag [#allocation4], %s200_s14 }
  0x1c   : > { %s576_s6 = sshra.s32 %s211_s24, 4  ;;  %s583_s16 = scalar_lea.hbm %s855_s0, 24  ;;  %s577_s6 = int_to_ptr.hbm [resolvable:$true] %s576_s6 }
  0x1d   : > { %s578_s7 = scalar_lea.hbm %s577_s6, 8  ;;  %p580_p7 = pneg %p787_p5 }
  0x1e   : > { %p579_p6 = scmp.ne.s32.totalorder %s577_s6, %s578_s7  ;;  %p584_p10 = scmp.lt.s32.totalorder %s577_s6, %s855_s0 }
  0x1f   : > { %p585_p13 = scmp.lt.s32.totalorder %s583_s16, %s578_s7 }
  0x20   : > { %p581_p8 = pnand %p580_p7, %p579_p6 }
  0x21   : > { %p586_p0 = por %p585_p13, %p584_p10 }
  0x22   : > { %p582_p9 = pneg %p581_p8 }
  0x24   : > { %p587_p4 = pnand %p586_p0, %p582_p9 }
  0x26   : > { %590 = shalt.err (!%p587_p4)
}
  0x27   : > { %497 = dma.hbm_to_vmem [thread:$0]  (!%p787_p5), %s211_s24, 128, %s213_s28, %s201_s30  }
  0x28   : > { %221 = sbr.rel (%p743_p3) target bundleno = 360 (0x168), region = 40  ;;  %s804_s14 = sand.u32 (!%p743_p3), 1, %s668_s21  }
  0x29   : > { %s457_s19 = sshll.u32 (!%p743_p3), %s804_s14, 3  ;;  %s224_s4 = scalar_lea.sflag (!%p743_p3), [#allocation4], %s804_s14 }
  0x2a   : > { %s227_s25 = scalar_lea.vmem (!%p743_p3), [#allocation3], %s457_s19 }
  0x2d   : > { %651 = dma.done.wait (%p769_p11), %s224_s4, 128  }
  0x2e   : > { %653 = vsyncadd (%p769_p11), %s224_s4, 4294967168 }
  0x2f   : > { %655 = dma.done.wait (%p44_p1), [#allocation7], 512  }
  0x30   : > { %657 = vsyncadd (%p44_p1), [#allocation7], 4294966784  ;;  %v481_v0 = vld [vmem:[#allocation6 + $0x18] sm:$0xff]  ;;  %v480_v1 = vld [vmem:[#allocation6 + $0x10] sm:$0xff]  ;;  %vm298_vm0 = vcmask 523264   ;;  %s318_s29 = sld [smem:[#allocation2]]  ;;  %s370_s7 = scalar_lea.hbm %s860_s5, %s738_s26 }
  0x31   : > { %306 = vmatpush.bf16.msra.mxu0 %v481_v0  ;;  %v479_v2 = vld [vmem:[#allocation6 + $0x8] sm:$0xff]  ;;  %v478_v3 = vld [vmem:[#allocation6] sm:$0xff]  ;;  %v260_v4 = vld [vmem:[%s227_s25] sm:$0xff]  ;;  %s258_s9 = scalar_lea.vmem [#allocation8], %s804_s14  ;;  %s374_s16 = sshll.u32 %s370_s7, 4  ;;  %vm359_vm4 = vcmask 57344   ;;  %s375_s16 = int_to_ptr.hbm [resolvable:$true] %s374_s16 }
  0x32   : > { %v261_v5 = vpack.c.bf16 %v260_v4, %v260_v4  ;;  %v541_v6 = vld [vmem:[%s857_s2] ss:$0 sm:$0xff]  ;;  %s372_s10 = sshll.u32 %s258_s9, 4  ;;  %s362_s26 = scalar_lea.sflag [#allocation5], %s804_s14  ;;  %s373_s10 = int_to_ptr.vmem [resolvable:$true] %s372_s10 }
  0x33   : > { %v317_v11 = vld [vmem:[%s858_s3] sm:$0x1]  ;;  %s620_s17 = sshra.s32 %s375_s16, 4  ;;  %s626_s25 = scalar_lea.hbm %s860_s5, 3  ;;  %s621_s17 = int_to_ptr.hbm [resolvable:$true] %s620_s17 }
  0x34   : > { %s622_s18 = scalar_lea.hbm %s621_s17, 1  ;;  %p627_p5 = scmp.lt.s32.totalorder %s621_s17, %s860_s5 }
  0x35   : > { %307 = vmatpush.bf16.msra.mxu0 %v480_v1  ;;  %p623_p1 = scmp.ne.s32.totalorder %s621_s17, %s622_s18  ;;  %p628_p6 = scmp.lt.s32.totalorder %s626_s25, %s622_s18 }
  0x36   : > { %v319_v13 = vstv %s318_s29 }
  0x37   : > { %p624_p3 = pnand %p623_p1, %p773_p12  ;;  %p629_p7 = por %p628_p6, %p627_p5 }
  0x39   : > { %308 = vmatpush.bf16.msra.mxu0 %v479_v2  ;;  %p625_p11 = pneg %p624_p3 }
  0x3b   : > { %p630_p8 = pnand %p629_p7, %p625_p11 }
  0x3d   : > { %309 = vmatpush.bf16.msra.mxu0 %v478_v3 }
  0x40   : > { %475 = vmatmul.msk.bf16.vlgmr.msra.gmra.mxu0 %vm298_vm0, %v261_v5 }
  0xbd   : > { %v311_v7 = vpop.f32.mrf.mxu0 }
  0xbe   : > { %v312_v8 = vadd.f32 %v541_v6, %v311_v7 }
  0xc0   : > { %v315_v9 = vmul.f32 0.1, %v312_v8 }
  0xc2   : > { %v316_v10 = vmax.f32 %v312_v8, %v315_v9 }
  0xc4   : > { %335 = vmatpush.xpose.msra.mxu1 %v316_v10 }
  0xc5   : > { %v313_v12 = vpop.f32.mrf.mxu0 }
  0xc7   : > { %336 = vmatmul.f32.vlgmr.msra.gmra.mxu1 %v317_v11 }
 0x144   : > { %v337_v14 = vpop.f32.mrf.mxu1 }
 0x145   : > { %v338_v15 = vadd.f32 %v337_v14, %v319_v13 }
 0x147   : > { %v340_v16 = vsub.f32 0.0, %v338_v15 }
 0x149   : > { %v341_v17 = vmul.f32 1.442695, %v340_v16 }
 0x14b   : > { %542 = vpow2.f32 %v341_v17 }
 0x151   : > { %v543_v18 = vpop.eup %542 }
 0x152   : > { %v343_v19 = vadd.f32 1.0, %v543_v18 }
 0x154   : > { %544 = vrcp.f32 %v343_v19  ;;  %v355_v23 = vand.u32 2147483648, %v343_v19  ;;  %v353_v25 = vand.u32 2147483647, %v343_v19  ;;  %vm349_vm2 = vweird.f32 %v343_v19 }
 0x156   : > { %v356_v27 = vor.u32 1.1754944e-38, %v355_v23  ;;  %vm354_vm5 = vcmp.eq.f32.partialorder %v353_v25, 8.507059e+37 }
 0x15a   : > { %v545_v20 = vpop.eup %544 }
 0x15b   : > { %v345_v21 = vmul.f32 %v545_v20, %v343_v19  ;;  %vm350_vm1 = vweird.f32 %v545_v20 }
 0x15c   : > { %vm351_vm3 = vmor %vm349_vm2, %vm350_vm1 }
 0x15d   : > { %v346_v22 = vsub.f32 1.0, %v345_v21 }
 0x15f   : > { %v347_v24 = vmul.f32 %v545_v20, %v346_v22 }
 0x161   : > { %v348_v26 = vadd.f32 %v545_v20, %v347_v24 }
 0x163   : > { %v352_v28 = vsel %vm351_vm3, %v545_v20, %v348_v26 }
 0x164   : > { %v357_v29 = vsel %vm354_vm5, %v356_v27, %v352_v28 }
 0x165   : > { %360 = vst.msk [vmem:[%s258_s9] sm:$0x1] %vm359_vm4, %v357_v29 }
 0x166   : > { %633 = shalt.err (!%p630_p8)
}
 0x167   : > { %488 = dma.vmem_to_hbm [thread:$0]  (%p773_p12), %s373_s10, 16, %s375_s16, %s362_s26  }
 0x168 PF: > { %p505_p9 = scmp.ge.s32.totalorder %s676_s23, 2  ;;  %s386_s14 = sand.u32 1, %s664_s20  }
 0x169   : > { %s387_s24 = scalar_lea.sflag [#allocation5], %s386_s14 }
 0x16a   : > { %p499_p10 = pnand %p505_p9, %p778_p2 }
 0x16c   : > { %p500_p13 = pneg %p499_p10 }
 0x16e   : > { %659 = dma.done.wait (%p500_p13), %s387_s24, 16  }
 0x16f   : > { %661 = vsyncadd (%p500_p13), %s387_s24, 4294967280  ;;  %p20_p0 = scmp.ge.s32.totalorder %s753_s8, 5   ;;  %s866_s20 = smov %s668_s21 }
 0x170   : > { %s867_s21 = smov %s672_s22  ;;  %s868_s22 = smov %s765_s11 }
 0x171   : > { %s869_s23 = smov %s753_s8  ;;  %22 = sbr.rel (!%p20_p0) target bundleno = 8 (0x8), region = 89 }
 0x176   :  { %392 = vsyncpa [#allocation4], 1 }
 0x177   :  { %394 = vsyncpa [#allocation4 + $0x1], 1 }
 0x178   :  { %395 = vsyncpa [#allocation7], 1 }
 0x179   :  { %396 = vsyncpa [#allocation5], 1 }
 0x17a   :  { %398 = vsyncpa [#allocation5 + $0x1], 1 }

</bundles_post_ra>
